<compile_context>
chip_gen: v7x
topology: tpu7x:2x2x1
jax: 0.10.0
libtpu: 0.0.40
codegen_flags: <defaults>
</compile_context>

<pallas_src>
import functools
import random

import numpy as np
import jax
import jax.numpy as jnp
from jax import lax
from jax.experimental import pallas as pl
from jax.experimental.pallas import tpu as pltpu


# ----------------------------- host-side operator construction -----------------------------

def _gaussian_kernel1d(kernel_size: int, sigma: float) -> np.ndarray:
    # matches torchvision.transforms.functional._get_gaussian_kernel1d
    ksize_half = (kernel_size - 1) * 0.5
    x = np.linspace(-ksize_half, ksize_half, kernel_size, dtype=np.float64)
    pdf = np.exp(-0.5 * (x / sigma) ** 2)
    return (pdf / pdf.sum()).astype(np.float32)


def _blur_matrix(length: int, kernel1d: np.ndarray) -> np.ndarray:
    """Dense [length, length] operator = (valid-conv band) @ (reflect-pad)."""
    k = kernel1d.shape[0]
    pad = k // 2
    if pad >= length:
        raise ValueError(
            f"reflect pad {pad} must be < spatial dim {length} "
            f"(kernel_size={k} too large for this image)")
    lp = length + 2 * pad
    R = np.zeros((lp, length), dtype=np.float32)          # reflect-pad operator [lp, length]
    for i in range(lp):
        j = i - pad
        if j < 0:
            j = -j
        elif j >= length:
            j = 2 * (length - 1) - j
        R[i, j] = 1.0
    C = np.zeros((length, lp), dtype=np.float32)           # valid-conv band [length, lp]
    for o in range(length):
        C[o, o:o + k] = kernel1d
    return (C @ R).astype(np.float32)                       # [length, length]


def _block_diag(mat: np.ndarray, reps: int) -> np.ndarray:
    if reps == 1:
        return mat
    k = mat.shape[0]
    out = np.zeros((reps * k, reps * k), dtype=mat.dtype)
    for r in range(reps):
        out[r * k:(r + 1) * k, r * k:(r + 1) * k] = mat
    return out


@functools.lru_cache(maxsize=None)
def _packed_blur_operators(h: int, w: int, p: int, tg: int,
                           kernel_size: int, sigma: float):
    """Cache per config: (BH_bd [tg*h, tg*h], BWt_bd [p*w, p*w]) float32 numpy."""
    k1d = _gaussian_kernel1d(kernel_size, sigma)
    bh = _blur_matrix(h, k1d)                                   # (h, h)
    bwt = np.ascontiguousarray(_blur_matrix(w, k1d).T)          # (w, w) = B_w^T
    return _block_diag(bh, tg), _block_diag(bwt, p)


# --------------------------------- device / tiling heuristics -------------------------------

@functools.lru_cache(maxsize=1)
def _device_config():
    """Returns (vmem_limit_bytes, tiling_budget_bytes, two_tensorcores)."""
    vmem_cap = 128 * 1024 * 1024
    two_cores = False
    try:
        vmem_cap = int(pltpu.get_tpu_info().vmem_capacity_bytes)
    except Exception:
        pass
    try:
        kind = jax.devices()[0].device_kind.lower()
        two_cores = ("v7" in kind) or ("7x" in kind)            # v7x: 2 TensorCores / chip
    except Exception:
        pass
    # ~62% of physical VMEM, capped at 64 MiB (v5e/v6e: 64 MiB; v7x 64 MiB part -> ~40 MiB).
    vmem_limit = max(32 * 1024 * 1024, min(int(0.62 * vmem_cap), 64 * 1024 * 1024))
    budget = vmem_limit // 2                                     # headroom for compiler scratch
    return vmem_limit, budget, two_cores


def _choose_pack(num_planes: int, w: int) -> int:
    """Lane-packing factor P: planes packed side-by-side along lanes (P*W <= 256)."""
    if w >= 128:
        return 1
    cands = [p for p in range(1, num_planes + 1)
             if num_planes % p == 0 and p * w <= 256]
    lane_dense = [p for p in cands if (p * w) % 128 == 0]
    if lane_dense:
        return max(lane_dense)
    return max(cands) if cands else 1


def _choose_group_tile(g: int, h: int, pw: int, budget_bytes: int,
                       two_cores: bool) -> int:
    """Groups-per-block tg: divisor of g honoring the (8,128) rule, an explicit VMEM model
    (2x double-buffered in/out f32 + f32 intermediate + block-diag B_h + B_w^T), and a cap
    on block-diag H-pass waste (tg*h <= 1024).  Prefer >=2 grid steps only with 2 TCs."""
    divisors = [d for d in range(1, g + 1) if g % d == 0]
    legal = [d for d in divisors if (d * h) % 8 == 0 or d == g]
    if not legal:
        legal = [g]                                   # full-array block is always legal
    fixed = 4 * pw * pw                               # B_w^T block-diag (f32, single copy)

    def cost(d):
        rows = d * h
        return 20 * rows * pw + 4 * rows * rows       # 2x2 in/out bufs + z + B_h block-diag

    fits = [d for d in legal if cost(d) + fixed <= budget_bytes and d * h <= 1024]
    if not fits:
        fits = [min(legal)]
    if two_cores:
        multi = [d for d in fits if g // d >= 2]
        if multi:
            return max(multi)
    return max(fits)


# ------------------------------------- Pallas kernel ---------------------------------------

def _blur_block_kernel(x_ref, bh_ref, bwt_ref, o_ref):
    """x_ref/o_ref: (tg*H, P*W) packed planes; bh_ref: block-diag B_h; bwt_ref: block-diag B_w^T."""
    # H-pass: one MXU matmul over the whole block (block-diag == per-group B_h).
    z = jnp.dot(bh_ref[...], x_ref[...], preferred_element_type=jnp.float32)
    # W-pass last: lane-dense matmul whose result is a single unmasked full-block store.
    o_ref[...] = jnp.dot(z, bwt_ref[...],
                         preferred_element_type=jnp.float32).astype(o_ref.dtype)


@functools.partial(jax.jit,
                   static_argnames=("tg", "h", "vmem_limit", "single_buffer_consts"))
def _blur_packed(x2d, bh_bd, bwt_bd, *, tg, h, vmem_limit, single_buffer_consts):
    """x2d: (G*H, P*W) f32 packed planes; bh_bd: (tg*H, tg*H) f32; bwt_bd: (P*W, P*W) f32."""
    rows, pw = x2d.shape
    block_rows = tg * h
    grid = (rows // block_rows,)

    const_kw = {}
    if single_buffer_consts:
        # constant index_map -> second pipeline buffer is pure waste; single-buffer them.
        const_kw = dict(pipeline_mode=pl.Buffered(1))

    flops = 2 * rows * block_rows * pw + 2 * rows * pw * pw
    bytes_accessed = 8 * rows * pw + 4 * (block_rows * block_rows + pw * pw)

    return pl.pallas_call(
        _blur_block_kernel,
        out_shape=jax.ShapeDtypeStruct((rows, pw), x2d.dtype),
        grid_spec=pltpu.PrefetchScalarGridSpec(
            num_scalar_prefetch=0,
            grid=grid,
            in_specs=[
                pl.BlockSpec((block_rows, pw), lambda i: (i, 0)),          # packed planes
                pl.BlockSpec((block_rows, block_rows), lambda i: (0, 0),   # block-diag B_h
                             **const_kw),
                pl.BlockSpec((pw, pw), lambda i: (0, 0), **const_kw),      # block-diag B_w^T
            ],
            out_specs=pl.BlockSpec((block_rows, pw), lambda i: (i, 0)),
        ),
        compiler_params=pltpu.CompilerParams(
            dimension_semantics=("parallel",),
            vmem_limit_bytes=vmem_limit,
        ),
        cost_estimate=pl.CostEstimate(
            flops=flops, transcendentals=0, bytes_accessed=bytes_accessed),
    )(x2d, bh_bd, bwt_bd)


_SINGLE_BUF_CONSTS_OK = True   # flipped to False if pl.Buffered(1) fails to lower


def gaussian_blur_pallas(image: jax.Array, kernel_size: int, sigma: float) -> jax.Array:
    """image: (N, C, H, W) float32 -> blurred image, same shape/dtype."""
    global _SINGLE_BUF_CONSTS_OK
    n, c, h, w = image.shape
    num_planes = n * c

    p = _choose_pack(num_planes, w)                 # planes packed along lanes
    g = num_planes // p                             # number of packed groups
    vmem_limit, budget, two_cores = _device_config()
    tg = _choose_group_tile(g, h, p * w, budget, two_cores)

    bh_np, bwt_np = _packed_blur_operators(h, w, p, tg, int(kernel_size), float(sigma))
    bh_bd = jnp.asarray(bh_np)                      # f32: no double bf16 rounding
    bwt_bd = jnp.asarray(bwt_np)

    # Pack planes: (N*C, H, W) -> (G, H, P*W) so the last axis is lane-dense.
    if p > 1:
        x2d = jnp.transpose(image.reshape(g, p, h, w), (0, 2, 1, 3)).reshape(g * h, p * w)
    else:
        x2d = image.reshape(num_planes * h, w)

    kwargs = dict(tg=tg, h=h, vmem_limit=vmem_limit)
    if _SINGLE_BUF_CONSTS_OK:
        try:
            out2d = _blur_packed(x2d, bh_bd, bwt_bd, single_buffer_consts=True, **kwargs)
        except Exception:
            _SINGLE_BUF_CONSTS_OK = False
    if not _SINGLE_BUF_CONSTS_OK:
        out2d = _blur_packed(x2d, bh_bd, bwt_bd, single_buffer_consts=False, **kwargs)

    if p > 1:
        out = jnp.transpose(out2d.reshape(g, h, p, w), (0, 2, 1, 3))
    else:
        out = out2d
    return out.reshape(n, c, h, w)


# --------------------------------- module-equivalent wrapper --------------------------------

class GaussianBlurPallas:
    """Mirrors Gaussian_blur(nn.Module): random (filter_size, sigma) choice, then blur."""

    def __init__(self, sigma, is_train):
        self.sigma = list(np.array(sigma).reshape(-1))
        self.filter_size = [3, 5, 25]
        if not is_train:
            self.sigma = [self.sigma[-1]]
            self.filter_size = [self.filter_size[-1]]

    def __call__(self, image):
        # random choice stays host-side, exactly like the original forward()
        index = random.choice(np.arange(len(self.sigma)))
        return gaussian_blur_pallas(
            image, int(self.filter_size[index]), float(self.sigma[index]))


# ------------------------------------- reference & test -------------------------------------

def _reference_blur(image, kernel_size, sigma):
    """Pure-JAX f32 reference: reflect pad + depthwise conv (torchvision semantics)."""
    n, c, h, w = image.shape
    k1d = jnp.asarray(_gaussian_kernel1d(kernel_size, sigma))
    k2d = jnp.outer(k1d, k1d)
    pad = kernel_size // 2
    xp = jnp.pad(image, ((0, 0), (0, 0), (pad, pad), (pad, pad)), mode="reflect")
    kern = jnp.broadcast_to(k2d, (c, 1, kernel_size, kernel_size))   # depthwise OIHW
    return lax.conv_general_dilated(
        xp, kern, window_strides=(1, 1), padding="VALID",
        dimension_numbers=("NCHW", "OIHW", "NCHW"), feature_group_count=c,
        precision=lax.Precision.HIGHEST)


if __name__ == "__main__":
    random.seed(0)   # forward uses random.choice; deterministic anyway for is_train=False
    key = jax.random.PRNGKey(0)
    x = jax.random.normal(key, (2, 4, 16, 16), dtype=jnp.float32)

    # Module configured like eval mode: uses filter_size=25, sigma=sigma[-1]=2.0
    blur = GaussianBlurPallas(sigma=[0.5, 1.0, 2.0], is_train=False)
    y = jax.block_until_ready(blur(x))

    # f32 end-to-end kernel vs f32 (HIGHEST precision) depthwise-conv reference.
    y_ref = jax.block_until_ready(_reference_blur(x, 25, 2.0))
    np.testing.assert_allclose(np.asarray(y), np.asarray(y_ref), rtol=2e-2, atol=2e-2)

    print("KERNEL_OK")
</pallas_src>

<mosaic_0001>
module attributes {stable_mosaic.version = 11 : i64} {
  func.func @_blur_block_kernel(%arg0: i32, %arg1: memref<16x128xf32, #tpu.memory_space<vmem>>, %arg2: memref<16x16xf32, #tpu.memory_space<vmem>>, %arg3: memref<128x128xf32, #tpu.memory_space<vmem>>, %arg4: memref<16x128xf32, #tpu.memory_space<vmem>>) attributes {dimension_semantics = [#tpu.dimension_semantics<parallel>], iteration_bounds = array<i64: 1>, scalar_prefetch = 0 : i64, scratch_operands = 0 : i64, tpu.core_type = #tpu.core_type<tc>, window_params = [{transform_indices = @transform_0, window_bounds = array<i64: 16, 128>}, {pipeline_mode = #tpu.pipeline_mode<synchronous>, transform_indices = @transform_1, window_bounds = array<i64: 16, 16>}, {pipeline_mode = #tpu.pipeline_mode<synchronous>, transform_indices = @transform_2, window_bounds = array<i64: 128, 128>}, {transform_indices = @transform_3, window_bounds = array<i64: 16, 128>}]} {
    %c0 = arith.constant 0 : index
    %c0_0 = arith.constant 0 : index
    %0 = vector.load %arg2[%c0, %c0_0] : memref<16x16xf32, #tpu.memory_space<vmem>>, vector<16x16xf32>
    %c0_1 = arith.constant 0 : index
    %c0_2 = arith.constant 0 : index
    %1 = vector.load %arg1[%c0_1, %c0_2] : memref<16x128xf32, #tpu.memory_space<vmem>>, vector<16x128xf32>
    %cst = arith.constant dense<0.000000e+00> : vector<16x128xf32>
    %2 = tpu.matmul %0, %1, %cst {dimension_numbers = #tpu.dot_dimension_numbers<[1], [0], [0], [1], [0, 0, 1, 1], [], []>} : vector<16x16xf32>, vector<16x128xf32>, vector<16x128xf32> -> vector<16x128xf32>
    %c0_3 = arith.constant 0 : index
    %c0_4 = arith.constant 0 : index
    %3 = vector.load %arg3[%c0_3, %c0_4] : memref<128x128xf32, #tpu.memory_space<vmem>>, vector<128x128xf32>
    %cst_5 = arith.constant dense<0.000000e+00> : vector<16x128xf32>
    %4 = tpu.matmul %2, %3, %cst_5 {dimension_numbers = #tpu.dot_dimension_numbers<[1], [0], [0], [1], [0, 0, 1, 1], [], []>} : vector<16x128xf32>, vector<128x128xf32>, vector<16x128xf32> -> vector<16x128xf32>
    %c0_6 = arith.constant 0 : index
    %c0_7 = arith.constant 0 : index
    %5 = vector.load %arg4[%c0_6, %c0_7] : memref<16x128xf32, #tpu.memory_space<vmem>>, vector<16x128xf32>
    tpu.vector_store %arg4[%c0_6, %c0_7], %4 {strides = array<i32>} : memref<16x128xf32, #tpu.memory_space<vmem>>, vector<16x128xf32>,
    return
  }
  func.func @transform_0(%arg0: i32) -> (i32, i32) {
    %c0_i32 = arith.constant 0 : i32
    %c0_i32_0 = arith.constant 0 : i32
    return %arg0, %c0_i32 : i32, i32
  }
  func.func @transform_1(%arg0: i32) -> (i32, i32) {
    %c0_i32 = arith.constant 0 : i32
    %c0_i32_0 = arith.constant 0 : i32
    %c0_i32_1 = arith.constant 0 : i32
    return %c0_i32, %c0_i32_0 : i32, i32
  }
  func.func @transform_2(%arg0: i32) -> (i32, i32) {
    %c0_i32 = arith.constant 0 : i32
    %c0_i32_0 = arith.constant 0 : i32
    %c0_i32_1 = arith.constant 0 : i32
    return %c0_i32, %c0_i32_0 : i32, i32
  }
  func.func @transform_3(%arg0: i32) -> (i32, i32) {
    %c0_i32 = arith.constant 0 : i32
    %c0_i32_0 = arith.constant 0 : i32
    return %arg0, %c0_i32 : i32, i32
  }
}

module attributes {stable_mosaic.version = 11 : i64} {
  func.func @_blur_block_kernel(%arg0: i32, %arg1: memref<16x128xf32, #tpu.memory_space<vmem>>, %arg2: memref<16x16xf32, #tpu.memory_space<vmem>>, %arg3: memref<128x128xf32, #tpu.memory_space<vmem>>, %arg4: memref<16x128xf32, #tpu.memory_space<vmem>>) attributes {dimension_semantics = [#tpu.dimension_semantics<parallel>], iteration_bounds = array<i64: 1>, scalar_prefetch = 0 : i64, scratch_operands = 0 : i64, tpu.core_type = #tpu.core_type<tc>, window_params = [{transform_indices = @transform_0, window_bounds = array<i64: 16, 128>}, {pipeline_mode = #tpu.pipeline_mode<synchronous>, transform_indices = @transform_1, window_bounds = array<i64: 16, 16>}, {pipeline_mode = #tpu.pipeline_mode<synchronous>, transform_indices = @transform_2, window_bounds = array<i64: 128, 128>}, {transform_indices = @transform_3, window_bounds = array<i64: 16, 128>}]} {
    %c0 = arith.constant 0 : index
    %c0_0 = arith.constant 0 : index
    %0 = vector.load %arg2[%c0, %c0_0] : memref<16x16xf32, #tpu.memory_space<vmem>>, vector<16x16xf32>
    %c0_1 = arith.constant 0 : index
    %c0_2 = arith.constant 0 : index
    %1 = vector.load %arg1[%c0_1, %c0_2] : memref<16x128xf32, #tpu.memory_space<vmem>>, vector<16x128xf32>
    %cst = arith.constant dense<0.000000e+00> : vector<16x128xf32>
    %2 = tpu.matmul %0, %1, %cst {dimension_numbers = #tpu.dot_dimension_numbers<[1], [0], [0], [1], [0, 0, 1, 1], [], []>} : vector<16x16xf32>, vector<16x128xf32>, vector<16x128xf32> -> vector<16x128xf32>
    %c0_3 = arith.constant 0 : index
    %c0_4 = arith.constant 0 : index
    %3 = vector.load %arg3[%c0_3, %c0_4] : memref<128x128xf32, #tpu.memory_space<vmem>>, vector<128x128xf32>
    %cst_5 = arith.constant dense<0.000000e+00> : vector<16x128xf32>
    %4 = tpu.matmul %2, %3, %cst_5 {dimension_numbers = #tpu.dot_dimension_numbers<[1], [0], [0], [1], [0, 0, 1, 1], [], []>} : vector<16x128xf32>, vector<128x128xf32>, vector<16x128xf32> -> vector<16x128xf32>
    %c0_6 = arith.constant 0 : index
    %c0_7 = arith.constant 0 : index
    %5 = vector.load %arg4[%c0_6, %c0_7] : memref<16x128xf32, #tpu.memory_space<vmem>>, vector<16x128xf32>
    tpu.vector_store %arg4[%c0_6, %c0_7], %4 {strides = array<i32>} : memref<16x128xf32, #tpu.memory_space<vmem>>, vector<16x128xf32>,
    return
  }
  func.func @transform_0(%arg0: i32) -> (i32, i32) {
    %c0_i32 = arith.constant 0 : i32
    %c0_i32_0 = arith.constant 0 : i32
    return %arg0, %c0_i32 : i32, i32
  }
  func.func @transform_1(%arg0: i32) -> (i32, i32) {
    %c0_i32 = arith.constant 0 : i32
    %c0_i32_0 = arith.constant 0 : i32
    %c0_i32_1 = arith.constant 0 : i32
    return %c0_i32, %c0_i32_0 : i32, i32
  }
  func.func @transform_2(%arg0: i32) -> (i32, i32) {
    %c0_i32 = arith.constant 0 : i32
    %c0_i32_0 = arith.constant 0 : i32
    %c0_i32_1 = arith.constant 0 : i32
    return %c0_i32, %c0_i32_0 : i32, i32
  }
  func.func @transform_3(%arg0: i32) -> (i32, i32) {
    %c0_i32 = arith.constant 0 : i32
    %c0_i32_0 = arith.constant 0 : i32
    return %arg0, %c0_i32 : i32, i32
  }
}

</mosaic_0001>

<bundles_post_ra>
// kernel: _blur_packed.1
= control target key start
LH: loop header
LB: loop body
LE: loop exit
PB: predicated region body
PF: predicated region fallthrough
CT: control target
= control target key end

     0   :  { %8 = vsyncpa [#allocation3], 0  ;;  %s550_s0 = inlined_call_operand.hbm [shape: f32[16,128], index: 0, kind: input, shape index: {}]   ;;  %s551_s1 = inlined_call_operand.hbm [shape: f32[16,16], index: 1, kind: input, shape index: {}]   ;;  %s552_s2 = inlined_call_operand.hbm [shape: f32[128,128], index: 2, kind: input, shape index: {}]   ;;  %s553_s3 = inlined_call_operand.hbm [shape: f32[16,128], index: 3, kind: output, shape index: {}]  }
   0x1   :  { %9 = vsyncpa [#allocation6], 0 }
   0x2   :  { %10 = vsyncpa [#allocation4], 0  ;;  %s455_s12 = smov [#allocation5]   ;;  %s456_s14 = smov [#allocation2]  }
   0x3   :  { %s28_s13 = sshll.u32 %s455_s12, 4  ;;  %s16_s15 = sshll.u32 %s456_s14, 4  ;;  %s29_s13 = int_to_ptr.vmem [resolvable:$true] %s28_s13  ;;  %s481_s15 = int_to_ptr.vmem [resolvable:$true] %s16_s15 }
   0x4   :  { %s361_s18 = scalar_lea.hbm %s551_s1, 256 }
   0x5   :  { %p362_p0 = scmp.ne.s32.totalorder %s551_s1, %s361_s18  ;;  %p365_p1 = scmp.lt.u32.totalorder %s361_s18, %s551_s1 }
   0x7   :  { %p367_p2 = pnand %p365_p1, %p362_p0 }
   0x9   :  { %370 = shalt.err (!%p367_p2)
}
   0xa   :  { %s371_s23 = scalar_lea.vmem %s29_s13, 256  ;;  %p376_p4 = scmp.lt.s32.totalorder %s29_s13, %s29_s13 }
   0xb   :  { %p372_p3 = scmp.ne.s32.totalorder %s29_s13, %s371_s23  ;;  %p377_p5 = scmp.lt.s32.totalorder %s371_s23, %s371_s23 }
   0xd   :  { %p378_p6 = por %p377_p5, %p376_p4 }
   0xf   :  { %p379_p7 = pnand %p378_p6, %p372_p3 }
  0x11   :  { %382 = shalt.err (!%p379_p7)
}
  0x12   :  { %s457_s24 = smov 128   ;;  %s458_s25 = smov 8  }
  0x13   :  { %34 = dma.hbm_to_vmem [thread:$0]  %s551_s1, 256, %s29_s13, [#allocation6], %s457_s24, %s457_s24, %s458_s25  }
  0x14   :  { %s383_s30 = scalar_lea.hbm %s550_s0, 256 }
  0x15   :  { %p384_p8 = scmp.ne.s32.totalorder %s550_s0, %s383_s30  ;;  %p387_p9 = scmp.lt.u32.totalorder %s383_s30, %s550_s0 }
  0x17   :  { %p389_p10 = pnand %p387_p9, %p384_p8 }
  0x19   :  { %392 = shalt.err (!%p389_p10)
}
  0x1a   :  { %s393_s8 = scalar_lea.vmem %s481_s15, 256  ;;  %p398_p12 = scmp.lt.s32.totalorder %s481_s15, %s481_s15 }
  0x1b   :  { %p394_p11 = scmp.ne.s32.totalorder %s481_s15, %s393_s8  ;;  %p399_p13 = scmp.lt.s32.totalorder %s393_s8, %s393_s8 }
  0x1d   :  { %p400_p0 = por %p399_p13, %p398_p12 }
  0x1f   :  { %p401_p1 = pnand %p400_p0, %p394_p11 }
  0x21   :  { %404 = shalt.err (!%p401_p1)
}
  0x22   :  { %22 = dma.hbm_to_vmem [thread:$0]  %s550_s0, 256, %s481_s15, [#allocation3], %s457_s24, %s457_s24, %s458_s25  }
  0x23   :  { %s459_s10 = smov [#allocation7]   ;;  %s405_s14 = scalar_lea.hbm %s552_s2, 2048 }
  0x24   :  { %s40_s11 = sshll.u32 %s459_s10, 4  ;;  %p406_p2 = scmp.ne.s32.totalorder %s552_s2, %s405_s14  ;;  %s41_s11 = int_to_ptr.vmem [resolvable:$true] %s40_s11 }
  0x25   :  { %p409_p3 = scmp.lt.u32.totalorder %s405_s14, %s552_s2 }
  0x27   :  { %p411_p4 = pnand %p409_p3, %p406_p2 }
  0x29   :  { %414 = shalt.err (!%p411_p4)
}
  0x2a   :  { %s415_s20 = scalar_lea.vmem %s41_s11, 2048  ;;  %p420_p6 = scmp.lt.s32.totalorder %s41_s11, %s41_s11 }
  0x2b   :  { %p416_p5 = scmp.ne.s32.totalorder %s41_s11, %s415_s20  ;;  %p421_p7 = scmp.lt.s32.totalorder %s415_s20, %s415_s20 }
  0x2d   :  { %p422_p8 = por %p421_p7, %p420_p6 }
  0x2f   :  { %p423_p9 = pnand %p422_p8, %p416_p5 }
  0x31   :  { %426 = shalt.err (!%p423_p9)
}
  0x32   :  { %46 = dma.hbm_to_vmem [thread:$0]  %s552_s2, 2048, %s41_s11, [#allocation6], %s457_s24, %s457_s24, %s458_s25  }
  0x33   :  { %449 = dma.done.wait [#allocation3], 256  }
  0x34   :  { %450 = vsyncadd [#allocation3], 4294967040 }
  0x35   :  { %451 = dma.done.wait [#allocation6], 2304  }
  0x36   :  { %452 = vsyncadd [#allocation6], 4294964992  ;;  %vm60_vm0 = vcmask 130048   ;;  %v58_v0 = vld [vmem:[#allocation2] sm:$0xff]  ;;  %v59_v1 = vld [vmem:[#allocation2 + $0x8] sm:$0xff]  ;;  %s460_s2 = smov [#allocation8]  }
  0x37   :  { %v56_v2 = vld [vmem:[#allocation5] sm:$0xff]  ;;  %v319_v3 = vpack.c.bf16 %v59_v1, %v58_v0  ;;  %v142_v4 = vld [vmem:[#allocation7] sm:$0xff]  ;;  %v143_v5 = vld [vmem:[#allocation7 + $0x8] sm:$0xff]  ;;  %s240_s21 = sshll.u32 %s460_s2, 4  ;;  %s241_s21 = int_to_ptr.vmem [resolvable:$true] %s240_s21 }
  0x38   :  { %281 = vmatprep.mubr.msk.f32.mxu0 %vm60_vm0, %v56_v2  ;;  %v323_v6 = vpack.c.bf16 %v143_v5, %v142_v4  ;;  %v144_v7 = vld [vmem:[#allocation7 + $0x10] sm:$0xff]  ;;  %v145_v8 = vld [vmem:[#allocation7 + $0x18] sm:$0xff]  ;;  %v146_v10 = vld [vmem:[#allocation7 + $0x20] sm:$0xff]  ;;  %s427_s22 = scalar_lea.vmem %s241_s21, 256  ;;  %p432_p11 = scmp.lt.s32.totalorder %s241_s21, %s241_s21 }
  0x39   :  { %320 = vmatprep.subr.bf16.mxu0 %v319_v3  ;;  %v327_v9 = vpack.c.bf16 %v145_v8, %v144_v7  ;;  %v147_v11 = vld [vmem:[#allocation7 + $0x28] sm:$0xff]  ;;  %v57_v12 = vld [vmem:[#allocation5 + $0x8] sm:$0xff]  ;;  %v148_v14 = vld [vmem:[#allocation7 + $0x30] sm:$0xff]  ;;  %p428_p10 = scmp.ne.s32.totalorder %s241_s21, %s427_s22  ;;  %p433_p12 = scmp.lt.s32.totalorder %s427_s22, %s427_s22 }
  0x3a   :  { %322 = vmatpush3.bf16.msra.mxu0 %v319_v3  ;;  %324 = vmatprep.subr.bf16.mxu1 %v323_v6  ;;  %v331_v13 = vpack.c.bf16 %v147_v11, %v146_v10  ;;  %v149_v15 = vld [vmem:[#allocation7 + $0x38] sm:$0xff]  ;;  %v150_v17 = vld [vmem:[#allocation7 + $0x40] sm:$0xff]  ;;  %v151_v18 = vld [vmem:[#allocation7 + $0x48] sm:$0xff] }
  0x3b   :  { %326 = vmatpush3.bf16.msra.mxu1 %v323_v6  ;;  %v335_v16 = vpack.c.bf16 %v149_v15, %v148_v14  ;;  %v339_v19 = vpack.c.bf16 %v151_v18, %v150_v17  ;;  %v152_v20 = vld [vmem:[#allocation7 + $0x50] sm:$0xff]  ;;  %v153_v21 = vld [vmem:[#allocation7 + $0x58] sm:$0xff]  ;;  %v154_v23 = vld [vmem:[#allocation7 + $0x60] sm:$0xff]  ;;  %p434_p13 = por %p433_p12, %p432_p11 }
  0x3c   :  { %328 = vmatprep.subr.bf16.mxu1 %v327_v9  ;;  %v343_v22 = vpack.c.bf16 %v153_v21, %v152_v20  ;;  %v155_v24 = vld [vmem:[#allocation7 + $0x68] sm:$0xff]  ;;  %v156_v26 = vld [vmem:[#allocation7 + $0x70] sm:$0xff]  ;;  %v157_v27 = vld [vmem:[#allocation7 + $0x78] sm:$0xff] }
  0x3d   :  { %282 = vmatmul.mubr.msk.f32.vlgmr.msra.gmra.mrb[0].mxu0 %vm60_vm0, %v57_v12  ;;  %v347_v25 = vpack.c.bf16 %v155_v24, %v154_v23  ;;  %v351_v28 = vpack.c.bf16 %v157_v27, %v156_v26  ;;  %p435_p0 = pnand %p434_p13, %p428_p10 }
  0x3f   :  { %330 = vmatpush3.bf16.msra.mxu1 %v327_v9 }
  0x40   :  { %332 = vmatprep.subr.bf16.mxu1 %v331_v13 }
  0x43   :  { %334 = vmatpush3.bf16.msra.mxu1 %v331_v13 }
  0x44   :  { %336 = vmatprep.subr.bf16.mxu1 %v335_v16 }
  0x47   :  { %338 = vmatpush3.bf16.msra.mxu1 %v335_v16 }
  0x48   :  { %340 = vmatprep.subr.bf16.mxu1 %v339_v19 }
  0x4b   :  { %342 = vmatpush3.bf16.msra.mxu1 %v339_v19 }
  0x4c   :  { %344 = vmatprep.subr.bf16.mxu1 %v343_v22 }
  0x4f   :  { %346 = vmatpush3.bf16.msra.mxu1 %v343_v22 }
  0x50   :  { %348 = vmatprep.subr.bf16.mxu1 %v347_v25 }
  0x53   :  { %350 = vmatpush3.bf16.msra.mxu1 %v347_v25 }
  0x54   :  { %352 = vmatprep.subr.bf16.mxu1 %v351_v28 }
  0x57   :  { %354 = vmatpush3.bf16.msra.mxu1 %v351_v28 }
 0x110   :  { %v283_v29 = vpop.f32.mrb[0].mxu0 }
 0x111   :  { %v133_v30 = vpop.f32.mrb[1].mxu0 }
 0x112   :  { %316 = vmatprep.mubr.f32.mxu1 %v133_v30 }
 0x113   :  { %317 = vmatmul.mubr.f32.vlgmr.msra.gmra.mrb[0].mxu1 %v283_v29 }
 0x1e6   :  { %v318_v31 = vpop.f32.mrb[0].mxu1 }
 0x1e7   :  { %234 = vst [vmem:[#allocation8 + $0x8] sm:$0xff] %v318_v31  ;;  %v224_v32 = vpop.f32.mrb[1].mxu1 }
 0x1e8   :  { %233 = vst [vmem:[#allocation8] sm:$0xff] %v224_v32 }
 0x1e9   :  { %438 = shalt.err (!%p435_p0)
}
 0x1ea   :  { %s439_s27 = scalar_lea.hbm %s553_s3, 256 }
 0x1eb   :  { %p440_p1 = scmp.ne.s32.totalorder %s553_s3, %s439_s27  ;;  %p443_p2 = scmp.lt.u32.totalorder %s439_s27, %s553_s3 }
 0x1ed   :  { %p445_p3 = pnand %p443_p2, %p440_p1 }
 0x1ef   :  { %448 = shalt.err (!%p445_p3)
}
 0x1f0   :  { %246 = dma.vmem_to_hbm [thread:$0]  %s241_s21, 256, %s553_s3, [#allocation4], %s457_s24, %s457_s24, %s458_s25  }
 0x1f1   :  { %453 = dma.done.wait [#allocation4], 256  }
 0x1f2   :  { %454 = vsyncadd [#allocation4], 4294967040 }
 0x1f3   :  { %250 = vsyncpa [#allocation3], 1 }
 0x1f4   :  { %251 = vsyncpa [#allocation6], 1 }
 0x1f5   :  { %252 = vsyncpa [#allocation4], 1 }

// kernel: _blur_packed.1
= control target key start
LH: loop header
LB: loop body
LE: loop exit
PB: predicated region body
PF: predicated region fallthrough
CT: control target
= control target key end

     0   :  { %8 = vsyncpa [#allocation3], 0  ;;  %s550_s0 = inlined_call_operand.hbm [shape: f32[16,128], index: 0, kind: input, shape index: {}]   ;;  %s551_s1 = inlined_call_operand.hbm [shape: f32[16,16], index: 1, kind: input, shape index: {}]   ;;  %s552_s2 = inlined_call_operand.hbm [shape: f32[128,128], index: 2, kind: input, shape index: {}]   ;;  %s553_s3 = inlined_call_operand.hbm [shape: f32[16,128], index: 3, kind: output, shape index: {}]  }
   0x1   :  { %9 = vsyncpa [#allocation6], 0 }
   0x2   :  { %10 = vsyncpa [#allocation4], 0  ;;  %s455_s12 = smov [#allocation5]   ;;  %s456_s14 = smov [#allocation2]  }
   0x3   :  { %s28_s13 = sshll.u32 %s455_s12, 4  ;;  %s16_s15 = sshll.u32 %s456_s14, 4  ;;  %s29_s13 = int_to_ptr.vmem [resolvable:$true] %s28_s13  ;;  %s481_s15 = int_to_ptr.vmem [resolvable:$true] %s16_s15 }
   0x4   :  { %s361_s18 = scalar_lea.hbm %s551_s1, 256 }
   0x5   :  { %p362_p0 = scmp.ne.s32.totalorder %s551_s1, %s361_s18  ;;  %p365_p1 = scmp.lt.u32.totalorder %s361_s18, %s551_s1 }
   0x7   :  { %p367_p2 = pnand %p365_p1, %p362_p0 }
   0x9   :  { %370 = shalt.err (!%p367_p2)
}
   0xa   :  { %s371_s23 = scalar_lea.vmem %s29_s13, 256  ;;  %p376_p4 = scmp.lt.s32.totalorder %s29_s13, %s29_s13 }
   0xb   :  { %p372_p3 = scmp.ne.s32.totalorder %s29_s13, %s371_s23  ;;  %p377_p5 = scmp.lt.s32.totalorder %s371_s23, %s371_s23 }
   0xd   :  { %p378_p6 = por %p377_p5, %p376_p4 }
   0xf   :  { %p379_p7 = pnand %p378_p6, %p372_p3 }
  0x11   :  { %382 = shalt.err (!%p379_p7)
}
  0x12   :  { %s457_s24 = smov 128   ;;  %s458_s25 = smov 8  }
  0x13   :  { %34 = dma.hbm_to_vmem [thread:$0]  %s551_s1, 256, %s29_s13, [#allocation6], %s457_s24, %s457_s24, %s458_s25  }
  0x14   :  { %s383_s30 = scalar_lea.hbm %s550_s0, 256 }
  0x15   :  { %p384_p8 = scmp.ne.s32.totalorder %s550_s0, %s383_s30  ;;  %p387_p9 = scmp.lt.u32.totalorder %s383_s30, %s550_s0 }
  0x17   :  { %p389_p10 = pnand %p387_p9, %p384_p8 }
  0x19   :  { %392 = shalt.err (!%p389_p10)
}
  0x1a   :  { %s393_s8 = scalar_lea.vmem %s481_s15, 256  ;;  %p398_p12 = scmp.lt.s32.totalorder %s481_s15, %s481_s15 }
  0x1b   :  { %p394_p11 = scmp.ne.s32.totalorder %s481_s15, %s393_s8  ;;  %p399_p13 = scmp.lt.s32.totalorder %s393_s8, %s393_s8 }
  0x1d   :  { %p400_p0 = por %p399_p13, %p398_p12 }
  0x1f   :  { %p401_p1 = pnand %p400_p0, %p394_p11 }
  0x21   :  { %404 = shalt.err (!%p401_p1)
}
  0x22   :  { %22 = dma.hbm_to_vmem [thread:$0]  %s550_s0, 256, %s481_s15, [#allocation3], %s457_s24, %s457_s24, %s458_s25  }
  0x23   :  { %s459_s10 = smov [#allocation7]   ;;  %s405_s14 = scalar_lea.hbm %s552_s2, 2048 }
  0x24   :  { %s40_s11 = sshll.u32 %s459_s10, 4  ;;  %p406_p2 = scmp.ne.s32.totalorder %s552_s2, %s405_s14  ;;  %s41_s11 = int_to_ptr.vmem [resolvable:$true] %s40_s11 }
  0x25   :  { %p409_p3 = scmp.lt.u32.totalorder %s405_s14, %s552_s2 }
  0x27   :  { %p411_p4 = pnand %p409_p3, %p406_p2 }
  0x29   :  { %414 = shalt.err (!%p411_p4)
}
  0x2a   :  { %s415_s20 = scalar_lea.vmem %s41_s11, 2048  ;;  %p420_p6 = scmp.lt.s32.totalorder %s41_s11, %s41_s11 }
  0x2b   :  { %p416_p5 = scmp.ne.s32.totalorder %s41_s11, %s415_s20  ;;  %p421_p7 = scmp.lt.s32.totalorder %s415_s20, %s415_s20 }
  0x2d   :  { %p422_p8 = por %p421_p7, %p420_p6 }
  0x2f   :  { %p423_p9 = pnand %p422_p8, %p416_p5 }
  0x31   :  { %426 = shalt.err (!%p423_p9)
}
  0x32   :  { %46 = dma.hbm_to_vmem [thread:$0]  %s552_s2, 2048, %s41_s11, [#allocation6], %s457_s24, %s457_s24, %s458_s25  }
  0x33   :  { %449 = dma.done.wait [#allocation3], 256  }
  0x34   :  { %450 = vsyncadd [#allocation3], 4294967040 }
  0x35   :  { %451 = dma.done.wait [#allocation6], 2304  }
  0x36   :  { %452 = vsyncadd [#allocation6], 4294964992  ;;  %vm60_vm0 = vcmask 130048   ;;  %v58_v0 = vld [vmem:[#allocation2] sm:$0xff]  ;;  %v59_v1 = vld [vmem:[#allocation2 + $0x8] sm:$0xff]  ;;  %s460_s2 = smov [#allocation8]  }
  0x37   :  { %v56_v2 = vld [vmem:[#allocation5] sm:$0xff]  ;;  %v319_v3 = vpack.c.bf16 %v59_v1, %v58_v0  ;;  %v142_v4 = vld [vmem:[#allocation7] sm:$0xff]  ;;  %v143_v5 = vld [vmem:[#allocation7 + $0x8] sm:$0xff]  ;;  %s240_s21 = sshll.u32 %s460_s2, 4  ;;  %s241_s21 = int_to_ptr.vmem [resolvable:$true] %s240_s21 }
  0x38   :  { %281 = vmatprep.mubr.msk.f32.mxu0 %vm60_vm0, %v56_v2  ;;  %v323_v6 = vpack.c.bf16 %v143_v5, %v142_v4  ;;  %v144_v7 = vld [vmem:[#allocation7 + $0x10] sm:$0xff]  ;;  %v145_v8 = vld [vmem:[#allocation7 + $0x18] sm:$0xff]  ;;  %v146_v10 = vld [vmem:[#allocation7 + $0x20] sm:$0xff]  ;;  %s427_s22 = scalar_lea.vmem %s241_s21, 256  ;;  %p432_p11 = scmp.lt.s32.totalorder %s241_s21, %s241_s21 }
  0x39   :  { %320 = vmatprep.subr.bf16.mxu0 %v319_v3  ;;  %v327_v9 = vpack.c.bf16 %v145_v8, %v144_v7  ;;  %v147_v11 = vld [vmem:[#allocation7 + $0x28] sm:$0xff]  ;;  %v57_v12 = vld [vmem:[#allocation5 + $0x8] sm:$0xff]  ;;  %v148_v14 = vld [vmem:[#allocation7 + $0x30] sm:$0xff]  ;;  %p428_p10 = scmp.ne.s32.totalorder %s241_s21, %s427_s22  ;;  %p433_p12 = scmp.lt.s32.totalorder %s427_s22, %s427_s22 }
  0x3a   :  { %322 = vmatpush3.bf16.msra.mxu0 %v319_v3  ;;  %324 = vmatprep.subr.bf16.mxu1 %v323_v6  ;;  %v331_v13 = vpack.c.bf16 %v147_v11, %v146_v10  ;;  %v149_v15 = vld [vmem:[#allocation7 + $0x38] sm:$0xff]  ;;  %v150_v17 = vld [vmem:[#allocation7 + $0x40] sm:$0xff]  ;;  %v151_v18 = vld [vmem:[#allocation7 + $0x48] sm:$0xff] }
  0x3b   :  { %326 = vmatpush3.bf16.msra.mxu1 %v323_v6  ;;  %v335_v16 = vpack.c.bf16 %v149_v15, %v148_v14  ;;  %v339_v19 = vpack.c.bf16 %v151_v18, %v150_v17  ;;  %v152_v20 = vld [vmem:[#allocation7 + $0x50] sm:$0xff]  ;;  %v153_v21 = vld [vmem:[#allocation7 + $0x58] sm:$0xff]  ;;  %v154_v23 = vld [vmem:[#allocation7 + $0x60] sm:$0xff]  ;;  %p434_p13 = por %p433_p12, %p432_p11 }
  0x3c   :  { %328 = vmatprep.subr.bf16.mxu1 %v327_v9  ;;  %v343_v22 = vpack.c.bf16 %v153_v21, %v152_v20  ;;  %v155_v24 = vld [vmem:[#allocation7 + $0x68] sm:$0xff]  ;;  %v156_v26 = vld [vmem:[#allocation7 + $0x70] sm:$0xff]  ;;  %v157_v27 = vld [vmem:[#allocation7 + $0x78] sm:$0xff] }
  0x3d   :  { %282 = vmatmul.mubr.msk.f32.vlgmr.msra.gmra.mrb[0].mxu0 %vm60_vm0, %v57_v12  ;;  %v347_v25 = vpack.c.bf16 %v155_v24, %v154_v23  ;;  %v351_v28 = vpack.c.bf16 %v157_v27, %v156_v26  ;;  %p435_p0 = pnand %p434_p13, %p428_p10 }
  0x3f   :  { %330 = vmatpush3.bf16.msra.mxu1 %v327_v9 }
  0x40   :  { %332 = vmatprep.subr.bf16.mxu1 %v331_v13 }
  0x43   :  { %334 = vmatpush3.bf16.msra.mxu1 %v331_v13 }
  0x44   :  { %336 = vmatprep.subr.bf16.mxu1 %v335_v16 }
  0x47   :  { %338 = vmatpush3.bf16.msra.mxu1 %v335_v16 }
  0x48   :  { %340 = vmatprep.subr.bf16.mxu1 %v339_v19 }
  0x4b   :  { %342 = vmatpush3.bf16.msra.mxu1 %v339_v19 }
  0x4c   :  { %344 = vmatprep.subr.bf16.mxu1 %v343_v22 }
  0x4f   :  { %346 = vmatpush3.bf16.msra.mxu1 %v343_v22 }
  0x50   :  { %348 = vmatprep.subr.bf16.mxu1 %v347_v25 }
  0x53   :  { %350 = vmatpush3.bf16.msra.mxu1 %v347_v25 }
  0x54   :  { %352 = vmatprep.subr.bf16.mxu1 %v351_v28 }
  0x57   :  { %354 = vmatpush3.bf16.msra.mxu1 %v351_v28 }
 0x110   :  { %v283_v29 = vpop.f32.mrb[0].mxu0 }
 0x111   :  { %v133_v30 = vpop.f32.mrb[1].mxu0 }
 0x112   :  { %316 = vmatprep.mubr.f32.mxu1 %v133_v30 }
 0x113   :  { %317 = vmatmul.mubr.f32.vlgmr.msra.gmra.mrb[0].mxu1 %v283_v29 }
 0x1e6   :  { %v318_v31 = vpop.f32.mrb[0].mxu1 }
 0x1e7   :  { %234 = vst [vmem:[#allocation8 + $0x8] sm:$0xff] %v318_v31  ;;  %v224_v32 = vpop.f32.mrb[1].mxu1 }
 0x1e8   :  { %233 = vst [vmem:[#allocation8] sm:$0xff] %v224_v32 }
 0x1e9   :  { %438 = shalt.err (!%p435_p0)
}
 0x1ea   :  { %s439_s27 = scalar_lea.hbm %s553_s3, 256 }
 0x1eb   :  { %p440_p1 = scmp.ne.s32.totalorder %s553_s3, %s439_s27  ;;  %p443_p2 = scmp.lt.u32.totalorder %s439_s27, %s553_s3 }
 0x1ed   :  { %p445_p3 = pnand %p443_p2, %p440_p1 }
 0x1ef   :  { %448 = shalt.err (!%p445_p3)
}
 0x1f0   :  { %246 = dma.vmem_to_hbm [thread:$0]  %s241_s21, 256, %s553_s3, [#allocation4], %s457_s24, %s457_s24, %s458_s25  }
 0x1f1   :  { %453 = dma.done.wait [#allocation4], 256  }
 0x1f2   :  { %454 = vsyncadd [#allocation4], 4294967040 }
 0x1f3   :  { %250 = vsyncpa [#allocation3], 1 }
 0x1f4   :  { %251 = vsyncpa [#allocation6], 1 }
 0x1f5   :  { %252 = vsyncpa [#allocation4], 1 }

</bundles_post_ra>
